<compile_context>
chip_gen: v7x
topology: tpu7x:2x2x1
jax: 0.10.0
libtpu: 0.0.40
codegen_flags: <defaults>
</compile_context>

<pallas_src>
import functools
import math

import jax
import jax.numpy as jnp
from jax import lax
from jax.experimental import pallas as pl
from jax.experimental.pallas import tpu as pltpu


def _round_up(n, m):
    return ((n + m - 1) // m) * m


def _cdiv(a, b):
    return -(-a // b)


def _balanced_tile(size, unit, max_tile):
    """Return (tile, padded_size): tile is a multiple of `unit` and <= max(max_tile, unit);
    padded_size = tile * ntiles with near-equal tiles, so padding stays small."""
    max_tile = max(unit, (max_tile // unit) * unit)
    padded = _round_up(size, unit)
    if padded <= max_tile:
        return padded, padded
    ntiles = _cdiv(padded, max_tile)
    tile = _round_up(_cdiv(padded, ntiles), unit)
    return tile, tile * ntiles


def _normalized_cosine(x_ref, w_ref):
    """cos(x_i, w_j) for the current (tb, F) x tile and (tc, F) W tile."""
    x = x_ref[...]
    w = w_ref[...]
    xf = x.astype(jnp.float32)
    wf = w.astype(jnp.float32)
    # 1 / max(||row||, 1e-12)  ==  rsqrt(max(sum(row^2), 1e-24))   (F.normalize)
    inv_wn = lax.rsqrt(jnp.maximum(jnp.sum(wf * wf, axis=-1, keepdims=True), 1e-24))
    inv_xn = lax.rsqrt(jnp.maximum(jnp.sum(xf * xf, axis=-1, keepdims=True), 1e-24))
    # Pre-scale W rows (natural (tc,1) broadcast, no transpose); keep MXU input dtype.
    wn = (wf * inv_wn).astype(w.dtype)
    raw = lax.dot_general(
        x, wn,
        dimension_numbers=(((1,), (1,)), ((), ())),
        preferred_element_type=jnp.float32,
    )  # (tb, tc)
    return raw * inv_xn


def _cosine_kernel(x_ref, w_ref, out_ref):
    out_ref[...] = _normalized_cosine(x_ref, w_ref).astype(out_ref.dtype)


def _arcface_kernel(x_ref, w_ref, label_ref, cls_ref, out_ref, *, s, cos_m, sin_m):
    cos = _normalized_cosine(x_ref, w_ref)                      # (tb, tc) f32
    one_hot = cls_ref[...] == label_ref[...]                    # (1,tc)==(tb,1) -> (tb,tc)
    # Per-row margin: each row has at most one target class in this class tile.
    cos_t = jnp.sum(jnp.where(one_hot, cos, 0.0), axis=-1, keepdims=True)   # (tb, 1)
    c = jnp.clip(cos_t, -1.0 + 1e-07, 1.0 - 1e-07)
    # s * cos(acos(c) + m), with s folded into the constants.
    phi = c * (s * cos_m) - jnp.sqrt(1.0 - c * c) * (s * sin_m)             # (tb, 1)
    out_ref[...] = jnp.where(one_hot, phi, cos * s).astype(out_ref.dtype)


@functools.partial(
    jax.jit,
    static_argnames=("s", "m", "out_dtype", "max_tile_b", "max_tile_c",
                     "vmem_budget_bytes"))
def arcface_forward(x, W, label=None, s=30.0, m=0.5, out_dtype=jnp.float32,
                    max_tile_b=512, max_tile_c=1024,
                    vmem_budget_bytes=40 * 1024 * 1024):
    """ArcFace forward. x: (B, F), W: (C, F), label: (B,) int or None -> (B, C)."""
    B, F = x.shape
    C, F2 = W.shape
    assert F == F2

    in_item = max(jnp.dtype(x.dtype).itemsize, jnp.dtype(W.dtype).itemsize)
    out_item = jnp.dtype(out_dtype).itemsize

    Fp = _round_up(F, 128)
    # TODO(synk): for very large feature dims (full-F tiles no longer fit the VMEM
    # budget) a K-tiled accumulator variant would be needed; typical ArcFace
    # embedding dims (128-4096) fit whole.

    budget = int(vmem_budget_bytes)
    # Batch tile: whole batch if it fits; keep the double-buffered x tile <= ~1/4 budget.
    tb_cap = min(max_tile_b,
                 max(8, (budget // 4) // max(1, 2 * Fp * in_item) // 8 * 8))
    tb, Bp = _balanced_tile(B, 8, tb_cap)
    # Class tile: fill most of what is left (double-buffered W tile + output tile).
    rem = max(0, budget - 2 * tb * Fp * in_item)
    per_col = 2 * Fp * in_item + 2 * tb * out_item
    tc_cap = min(max_tile_c, max(128, rem // per_col // 128 * 128))
    tc, Cp = _balanced_tile(C, 128, tc_cap)

    grid = (Bp // tb, Cp // tc)   # j (classes) innermost: x tile fetched once per i

    xp = x if (Bp == B and Fp == F) else jnp.pad(x, ((0, Bp - B), (0, Fp - F)))
    wp = W if (Cp == C and Fp == F) else jnp.pad(W, ((0, Cp - C), (0, Fp - F)))

    x_spec = pl.BlockSpec((tb, Fp), lambda i, j: (i, 0))
    w_spec = pl.BlockSpec((tc, Fp), lambda i, j: (j, 0))
    out_spec = pl.BlockSpec((tb, tc), lambda i, j: (i, j))

    est = (2 * (tb + tc) * Fp * in_item      # double-buffered x + W tiles
           + 2 * tb * tc * out_item          # double-buffered output tile
           + 2 * (tb + tc) * 4)              # label / class-id tiles (tiny)
    compiler_params = pltpu.CompilerParams(
        dimension_semantics=("parallel", "parallel"),
        vmem_limit_bytes=int(min(max(est * 5 // 4, 16 << 20), 48 << 20)),
    )
    out_shape = jax.ShapeDtypeStruct((Bp, Cp), out_dtype)

    if label is None:
        out = pl.pallas_call(
            _cosine_kernel,
            out_shape=out_shape,
            grid=grid,
            in_specs=[x_spec, w_spec],
            out_specs=out_spec,
            compiler_params=compiler_params,
        )(xp, wp)
    else:
        label2d = label.astype(jnp.int32).reshape(B, 1)
        if Bp != B:
            label2d = jnp.pad(label2d, ((0, Bp - B), (0, 0)), constant_values=-1)
        class_row = jnp.arange(Cp, dtype=jnp.int32).reshape(1, Cp)
        lbl_spec = pl.BlockSpec((tb, 1), lambda i, j: (i, 0))
        cls_spec = pl.BlockSpec((1, tc), lambda i, j: (0, j))
        kernel = functools.partial(_arcface_kernel, s=float(s),
                                   cos_m=math.cos(m), sin_m=math.sin(m))
        out = pl.pallas_call(
            kernel,
            out_shape=out_shape,
            grid=grid,
            in_specs=[x_spec, w_spec, lbl_spec, cls_spec],
            out_specs=out_spec,
            compiler_params=compiler_params,
        )(xp, wp, label2d, class_row)

    if Bp != B or Cp != C:
        out = out[:B, :C]
    return out


def _reference(x, W, label=None, s=30.0, m=0.5):
    xn = x / jnp.maximum(jnp.linalg.norm(x, axis=1, keepdims=True), 1e-12)
    wn = W / jnp.maximum(jnp.linalg.norm(W, axis=1, keepdims=True), 1e-12)
    logits = xn @ wn.T
    if label is None:
        return logits
    theta = jnp.arccos(jnp.clip(logits, -1.0 + 1e-07, 1.0 - 1e-07))
    target = jnp.cos(theta + m)
    one_hot = jax.nn.one_hot(label, W.shape[0], dtype=logits.dtype)
    return (logits * (1 - one_hot) + target * one_hot) * s


def _xavier_uniform(key, c, f):
    bound = math.sqrt(6.0 / (c + f))
    return jax.random.uniform(key, (c, f), dtype=jnp.float32, minval=-bound, maxval=bound)


if __name__ == "__main__":
    key = jax.random.PRNGKey(0)
    kx, kw, kl, kx2, kw2, kl2 = jax.random.split(key, 6)
    s_scale, margin = 30.0, 0.5

    # --- small, module-consistent shapes (single tile; C/F padded to 128) ---
    batch, num_features, num_classes = 8, 64, 32
    x = jax.random.normal(kx, (batch, num_features), dtype=jnp.float32)
    W = _xavier_uniform(kw, num_classes, num_features)
    label = jax.random.randint(kl, (batch,), 0, num_classes, dtype=jnp.int32)

    out = jax.block_until_ready(arcface_forward(x, W, label, s=s_scale, m=margin))
    ref = _reference(x, W, label, s=s_scale, m=margin)
    assert out.shape == (batch, num_classes)
    assert jnp.allclose(out, ref, atol=1e-3, rtol=1e-3), "mismatch vs reference (small)"

    # Label-less path (plain cosine logits).
    logits = jax.block_until_ready(arcface_forward(x, W, None))
    assert logits.shape == (batch, num_classes)
    assert jnp.allclose(logits, _reference(x, W, None), atol=1e-3, rtol=1e-3), "cosine mismatch"

    # --- multi-tile class axis (non-aligned C -> padding, 2 class tiles) ---
    B2, F2, C2 = 16, 256, 1100
    x2 = jax.random.normal(kx2, (B2, F2), dtype=jnp.float32)
    W2 = _xavier_uniform(kw2, C2, F2)
    label2 = jax.random.randint(kl2, (B2,), 0, C2, dtype=jnp.int32)
    out2 = jax.block_until_ready(arcface_forward(x2, W2, label2, s=s_scale, m=margin))
    ref2 = _reference(x2, W2, label2, s=s_scale, m=margin)
    assert out2.shape == (B2, C2)
    assert jnp.allclose(out2, ref2, atol=1e-2, rtol=1e-2), "mismatch vs reference (tiled C)"

    # --- force a multi-tile batch axis as well ---
    out3 = jax.block_until_ready(
        arcface_forward(x2, W2, label2, s=s_scale, m=margin, max_tile_b=8))
    assert jnp.allclose(out3, ref2, atol=1e-2, rtol=1e-2), "mismatch vs reference (tiled B)"

    # bf16 operand path (MXU consumes bf16, f32 epilogue) - smoke test.
    out_bf = jax.block_until_ready(
        arcface_forward(x.astype(jnp.bfloat16), W.astype(jnp.bfloat16), label,
                        s=s_scale, m=margin))
    assert out_bf.shape == (batch, num_classes)
    assert bool(jnp.all(jnp.isfinite(out_bf)))

    print("KERNEL_OK")
</pallas_src>

<mosaic_0001>
module attributes {stable_mosaic.version = 11 : i64} {
  func.func @_arcface_kernel(%arg0: i32, %arg1: i32, %arg2: memref<8x128xf32, #tpu.memory_space<vmem>>, %arg3: memref<128x128xf32, #tpu.memory_space<vmem>>, %arg4: memref<8x1xi32, #tpu.memory_space<vmem>>, %arg5: memref<1x128xi32, #tpu.memory_space<vmem>>, %arg6: memref<8x128xf32, #tpu.memory_space<vmem>>) attributes {dimension_semantics = [#tpu.dimension_semantics<parallel>, #tpu.dimension_semantics<parallel>], iteration_bounds = array<i64: 1, 1>, scalar_prefetch = 0 : i64, scratch_operands = 0 : i64, tpu.core_type = #tpu.core_type<tc>, window_params = [{transform_indices = @transform_0, window_bounds = array<i64: 8, 128>}, {transform_indices = @transform_1, window_bounds = array<i64: 128, 128>}, {transform_indices = @transform_2, window_bounds = array<i64: 8, 1>}, {transform_indices = @transform_3, window_bounds = array<i64: 1, 128>}, {transform_indices = @transform_4, window_bounds = array<i64: 8, 128>}]} {
    %c0 = arith.constant 0 : index
    %c0_0 = arith.constant 0 : index
    %0 = vector.load %arg2[%c0, %c0_0] : memref<8x128xf32, #tpu.memory_space<vmem>>, vector<8x128xf32>
    %c0_1 = arith.constant 0 : index
    %c0_2 = arith.constant 0 : index
    %1 = vector.load %arg3[%c0_1, %c0_2] : memref<128x128xf32, #tpu.memory_space<vmem>>, vector<128x128xf32>
    %2 = arith.mulf %1, %1 : vector<128x128xf32>
    %cst = arith.constant dense<0.000000e+00> : vector<128xf32>
    %3 = vector.multi_reduction <add>, %2, %cst [1] : vector<128x128xf32> to vector<128xf32>
    %4 = vector.shape_cast %3 : vector<128xf32> to vector<128x1xf32>
    %cst_3 = arith.constant 1.000000e-24 : f32
    %5 = vector.broadcast %cst_3 : f32 to vector<128x1xf32>
    %6 = arith.maximumf %4, %5 : vector<128x1xf32>
    %7 = math.rsqrt %6 : vector<128x1xf32>
    %8 = arith.mulf %0, %0 : vector<8x128xf32>
    %cst_4 = arith.constant dense<0.000000e+00> : vector<8xf32>
    %9 = vector.multi_reduction <add>, %8, %cst_4 [1] : vector<8x128xf32> to vector<8xf32>
    %10 = vector.shape_cast %9 : vector<8xf32> to vector<8x1xf32>
    %cst_5 = arith.constant 1.000000e-24 : f32
    %11 = vector.broadcast %cst_5 : f32 to vector<8x1xf32>
    %12 = arith.maximumf %10, %11 : vector<8x1xf32>
    %13 = math.rsqrt %12 : vector<8x1xf32>
    %14 = vector.broadcast %7 : vector<128x1xf32> to vector<128x128xf32>
    %15 = arith.mulf %1, %14 : vector<128x128xf32>
    %cst_6 = arith.constant dense<0.000000e+00> : vector<8x128xf32>
    %16 = tpu.matmul %0, %15, %cst_6 {dimension_numbers = #tpu.dot_dimension_numbers<[1], [1], [0], [0], [0, 0, 1, 0], [], []>} : vector<8x128xf32>, vector<128x128xf32>, vector<8x128xf32> -> vector<8x128xf32>
    %17 = vector.broadcast %13 : vector<8x1xf32> to vector<8x128xf32>
    %18 = arith.mulf %16, %17 : vector<8x128xf32>
    %c0_7 = arith.constant 0 : index
    %c0_8 = arith.constant 0 : index
    %19 = vector.load %arg5[%c0_7, %c0_8] : memref<1x128xi32, #tpu.memory_space<vmem>>, vector<1x128xi32>
    %c0_9 = arith.constant 0 : index
    %c0_10 = arith.constant 0 : index
    %20 = vector.load %arg4[%c0_9, %c0_10] : memref<8x1xi32, #tpu.memory_space<vmem>>, vector<8x1xi32>
    %21 = vector.broadcast %19 : vector<1x128xi32> to vector<8x128xi32>
    %22 = vector.broadcast %20 : vector<8x1xi32> to vector<8x128xi32>
    %23 = arith.cmpi eq, %21, %22 : vector<8x128xi32>
    %cst_11 = arith.constant 0.000000e+00 : f32
    %24 = vector.broadcast %cst_11 : f32 to vector<8x128xf32>
    %25 = arith.select %23, %18, %24 : vector<8x128xi1>, vector<8x128xf32>
    %cst_12 = arith.constant dense<0.000000e+00> : vector<8xf32>
    %26 = vector.multi_reduction <add>, %25, %cst_12 [1] : vector<8x128xf32> to vector<8xf32>
    %27 = vector.shape_cast %26 : vector<8xf32> to vector<8x1xf32>
    %cst_13 = arith.constant -0.99999988 : f32
    %cst_14 = arith.constant 0.99999988 : f32
    %28 = vector.broadcast %cst_13 : f32 to vector<8x1xf32>
    %29 = arith.maximumf %28, %27 : vector<8x1xf32>
    %30 = vector.broadcast %cst_14 : f32 to vector<8x1xf32>
    %31 = arith.minimumf %30, %29 : vector<8x1xf32>
    %cst_15 = arith.constant 26.3274765 : f32
    %32 = vector.broadcast %cst_15 : f32 to vector<8x1xf32>
    %33 = arith.mulf %31, %32 : vector<8x1xf32>
    %34 = arith.mulf %31, %31 : vector<8x1xf32>
    %cst_16 = arith.constant 1.000000e+00 : f32
    %35 = vector.broadcast %cst_16 : f32 to vector<8x1xf32>
    %36 = arith.subf %35, %34 : vector<8x1xf32>
    %37 = math.sqrt %36 : vector<8x1xf32>
    %cst_17 = arith.constant 14.3827658 : f32
    %38 = vector.broadcast %cst_17 : f32 to vector<8x1xf32>
    %39 = arith.mulf %37, %38 : vector<8x1xf32>
    %40 = arith.subf %33, %39 : vector<8x1xf32>
    %cst_18 = arith.constant 3.000000e+01 : f32
    %41 = vector.broadcast %cst_18 : f32 to vector<8x128xf32>
    %42 = arith.mulf %18, %41 : vector<8x128xf32>
    %43 = vector.shape_cast %40 : vector<8x1xf32> to vector<8x1xf32>
    %44 = vector.broadcast %43 : vector<8x1xf32> to vector<8x128xf32>
    %45 = arith.select %23, %44, %42 : vector<8x128xi1>, vector<8x128xf32>
    %c0_19 = arith.constant 0 : index
    %c0_20 = arith.constant 0 : index
    %46 = vector.load %arg6[%c0_19, %c0_20] : memref<8x128xf32, #tpu.memory_space<vmem>>, vector<8x128xf32>
    tpu.vector_store %arg6[%c0_19, %c0_20], %45 {strides = array<i32>} : memref<8x128xf32, #tpu.memory_space<vmem>>, vector<8x128xf32>,
    return
  }
  func.func @transform_0(%arg0: i32, %arg1: i32) -> (i32, i32) {
    %c0_i32 = arith.constant 0 : i32
    %c0_i32_0 = arith.constant 0 : i32
    return %arg0, %c0_i32 : i32, i32
  }
  func.func @transform_1(%arg0: i32, %arg1: i32) -> (i32, i32) {
    %c0_i32 = arith.constant 0 : i32
    %c0_i32_0 = arith.constant 0 : i32
    return %arg1, %c0_i32 : i32, i32
  }
  func.func @transform_2(%arg0: i32, %arg1: i32) -> (i32, i32) {
    %c0_i32 = arith.constant 0 : i32
    %c0_i32_0 = arith.constant 0 : i32
    return %arg0, %c0_i32 : i32, i32
  }
  func.func @transform_3(%arg0: i32, %arg1: i32) -> (i32, i32) {
    %c0_i32 = arith.constant 0 : i32
    %c0_i32_0 = arith.constant 0 : i32
    return %c0_i32, %arg1 : i32, i32
  }
  func.func @transform_4(%arg0: i32, %arg1: i32) -> (i32, i32) {
    %c0_i32 = arith.constant 0 : i32
    return %arg0, %arg1 : i32, i32
  }
}

</mosaic_0001>

<bundles_post_ra>
// kernel: arcface_forward.1
= control target key start
LH: loop header
LB: loop body
LE: loop exit
PB: predicated region body
PF: predicated region fallthrough
CT: control target
= control target key end

     0   :  { %s590_s0 = inlined_call_operand.vmem [shape: f32[8,128], index: 0, kind: input, shape index: {}]   ;;  %s591_s1 = inlined_call_operand.vmem [shape: f32[128,128], index: 1, kind: input, shape index: {}]   ;;  %s592_s2 = inlined_call_operand.vmem [shape: s32[8,1], index: 2, kind: input, shape index: {}]   ;;  %s593_s3 = inlined_call_operand.vmem [shape: s32[1,128], index: 3, kind: input, shape index: {}]   ;;  %s594_s4 = inlined_call_operand.hbm [shape: f32[8,128], index: 4, kind: output, shape index: {}]  }
   0x1   :  { %v429_v0 = vld [vmem:[%s591_s1] sm:$0xff]  ;;  %v434_v1 = vld [vmem:[%s591_s1 + $0x10] sm:$0xff]  ;;  %v439_v2 = vld [vmem:[%s591_s1 + $0x8] sm:$0xff] }
   0x2   :  { %v35_v3 = vmul.f32 %v429_v0, %v429_v0  ;;  %v37_v4 = vmul.f32 %v434_v1, %v434_v1  ;;  %v448_v5 = vld [vmem:[%s591_s1 + $0x18] sm:$0xff]  ;;  %v36_v6 = vmul.f32 %v439_v2, %v439_v2  ;;  %v457_v8 = vld [vmem:[%s591_s1 + $0x28] sm:$0xff]  ;;  %v462_v9 = vld [vmem:[%s591_s1 + $0x20] sm:$0xff] }
   0x3   :  { %v38_v7 = vmul.f32 %v448_v5, %v448_v5 }
   0x4   :  { %51 = vadd.xlane.f32.xlu0 %v35_v3  ;;  %55 = vadd.xlane.f32.xlu1 %v37_v4 }
   0x5   :  { %9 = vsyncpa [#allocation3], 0  ;;  %v40_v10 = vmul.f32 %v457_v8, %v457_v8  ;;  %v39_v11 = vmul.f32 %v462_v9, %v462_v9  ;;  %v471_v12 = vld [vmem:[%s591_s1 + $0x38] sm:$0xff]  ;;  %v476_v13 = vld [vmem:[%s591_s1 + $0x30] sm:$0xff]  ;;  %v396_v32 = vmov 0.0|0.0   ;;  %vm397_vm0 = vmmov 0  }
   0x6   :  { %v42_v14 = vmul.f32 %v471_v12, %v471_v12  ;;  %v41_v15 = vmul.f32 %v476_v13, %v476_v13  ;;  %v485_v16 = vld [vmem:[%s591_s1 + $0x48] sm:$0xff]  ;;  %v490_v17 = vld [vmem:[%s591_s1 + $0x40] sm:$0xff]  ;;  %v499_v20 = vld [vmem:[%s591_s1 + $0x58] sm:$0xff]  ;;  %305 = vmatprep.subr.bf16.mxu0 %v396_v32  ;;  %v398_v33 = vmov 0.0   ;;  %v399_v37 = vmov 0  }
   0x7   :  { %v44_v18 = vmul.f32 %v485_v16, %v485_v16  ;;  %v43_v19 = vmul.f32 %v490_v17, %v490_v17  ;;  %v504_v21 = vld [vmem:[%s591_s1 + $0x50] sm:$0xff]  ;;  %v46_v22 = vmul.f32 %v499_v20, %v499_v20  ;;  %v513_v24 = vld [vmem:[%s591_s1 + $0x68] sm:$0xff]  ;;  %v518_v25 = vld [vmem:[%s591_s1 + $0x60] sm:$0xff]  ;;  %302 = vmatprep.mubr.msk.f32.mxu0 %vm397_vm0, %v398_v33  ;;  %334 = vset.pattern.permute.xlu1 %v399_v37 }
   0x8   :  { %53 = vadd.xlane.f32.xlu0 %v36_v6  ;;  %57 = vadd.xlane.f32.xlu1 %v38_v7  ;;  %v45_v23 = vmul.f32 %v504_v21, %v504_v21  ;;  %v48_v26 = vmul.f32 %v513_v24, %v513_v24  ;;  %v47_v27 = vmul.f32 %v518_v25, %v518_v25  ;;  %v527_v28 = vld [vmem:[%s591_s1 + $0x78] sm:$0xff]  ;;  %v532_v29 = vld [vmem:[%s591_s1 + $0x70] sm:$0xff]  ;;  %v542_v34 = vld [vmem:[%s590_s0] sm:$0xff] }
   0x9   :  { %v50_v30 = vmul.f32 %v527_v28, %v527_v28  ;;  %v49_v31 = vmul.f32 %v532_v29, %v532_v29  ;;  %v115_v35 = vmul.f32 %v542_v34, %v542_v34  ;;  %v208_v36 = vld [vmem:[%s592_s2] sm:$0xff]  ;;  %335 = vset.pattern.permute.xlu0 %v399_v37 }
   0xc   :  { %61 = vadd.xlane.f32.xlu1 %v40_v10  ;;  %59 = vadd.xlane.f32.xlu0 %v39_v11 }
  0x10   :  { %65 = vadd.xlane.f32.xlu1 %v42_v14  ;;  %63 = vadd.xlane.f32.xlu0 %v41_v15 }
  0x14   :  { %69 = vadd.xlane.f32.xlu1 %v44_v18  ;;  %67 = vadd.xlane.f32.xlu0 %v43_v19 }
  0x18   :  { %73 = vadd.xlane.f32.xlu1 %v46_v22  ;;  %71 = vadd.xlane.f32.xlu0 %v45_v23 }
  0x1c   :  { %77 = vadd.xlane.f32.xlu1 %v48_v26  ;;  %75 = vadd.xlane.f32.xlu0 %v47_v27 }
  0x20   :  { %81 = vadd.xlane.f32.xlu1 %v50_v30  ;;  %79 = vadd.xlane.f32.xlu0 %v49_v31 }
  0x24   :  { %116 = vadd.xlane.f32.xlu0 %v115_v35 }
  0x31   :  { %214 = vperm.xlu1 %334, %v208_v36  }
  0x91   :  { %v52_v38 = vpop.xlane.xlu0 %51  ;;  %v56_v39 = vpop.xlane.xlu1 %55 }
  0x92   :  { %v83_v40 = vmax.f32 %v52_v38, 1e-24  ;;  %v85_v44 = vmax.f32 %v56_v39, 1e-24 }
  0x94   :  { %336 = vrsqrt.f32 %v83_v40 }
  0x95   :  { %v54_v41 = vpop.xlane.xlu0 %53  ;;  %v58_v42 = vpop.xlane.xlu1 %57 }
  0x96   :  { %v84_v43 = vmax.f32 %v54_v41, 1e-24  ;;  %v86_v45 = vmax.f32 %v58_v42, 1e-24 }
  0x98   :  { %338 = vrsqrt.f32 %v84_v43 }
  0x99   :  { %v62_v46 = vpop.xlane.xlu1 %61  ;;  %340 = vrsqrt.f32 %v85_v44  ;;  %v60_v47 = vpop.xlane.xlu0 %59 }
  0x9a   :  { %342 = vrsqrt.f32 %v86_v45  ;;  %v88_v48 = vmax.f32 %v62_v46, 1e-24  ;;  %v87_v49 = vmax.f32 %v60_v47, 1e-24 }
  0x9c   :  { %344 = vrsqrt.f32 %v88_v48 }
  0x9d   :  { %346 = vrsqrt.f32 %v87_v49  ;;  %v66_v52 = vpop.xlane.xlu1 %65  ;;  %v64_v55 = vpop.xlane.xlu0 %63 }
  0x9e   :  { %v337_v50 = vpop.eup %336  ;;  %v90_v58 = vmax.f32 %v66_v52, 1e-24  ;;  %v89_v60 = vmax.f32 %v64_v55, 1e-24 }
  0x9f   :  { %v120_v53 = vmul.f32 %v337_v50, %v429_v0 }
  0xa0   :  { %348 = vrsqrt.f32 %v90_v58 }
  0xa1   :  { %350 = vrsqrt.f32 %v89_v60  ;;  %v70_v63 = vpop.xlane.xlu1 %69  ;;  %v68_v0 = vpop.xlane.xlu0 %67 }
  0xa2   :  { %v339_v51 = vpop.eup %338  ;;  %v92_v6 = vmax.f32 %v70_v63, 1e-24  ;;  %v91_v7 = vmax.f32 %v68_v0, 1e-24 }
  0xa3   :  { %v121_v54 = vmul.f32 %v339_v51, %v439_v2  ;;  %v341_v56 = vpop.eup %340 }
  0xa4   :  { %v343_v59 = vpop.eup %342  ;;  %v122_v61 = vmul.f32 %v341_v56, %v434_v1  ;;  %352 = vrsqrt.f32 %v92_v6 }
  0xa5   :  { %v306_v57 = vpack.c.bf16 %v121_v54, %v120_v53  ;;  %v123_v62 = vmul.f32 %v343_v59, %v448_v5  ;;  %354 = vrsqrt.f32 %v91_v7  ;;  %v74_v1 = vpop.xlane.xlu1 %73  ;;  %v72_v15 = vpop.xlane.xlu0 %71 }
  0xa6   :  { %v345_v3 = vpop.eup %344  ;;  %v94_v19 = vmax.f32 %v74_v1, 1e-24  ;;  %v93_v22 = vmax.f32 %v72_v15, 1e-24 }
  0xa7   :  { %307 = vmatpush3.bf16.xpose.msra.mxu0 %v306_v57  ;;  %v347_v4 = vpop.eup %346  ;;  %v309_v2 = vpack.c.bf16 %v123_v62, %v122_v61  ;;  %v125_v11 = vmul.f32 %v345_v3, %v457_v8 }
  0xa8   :  { %308 = vmatprep.subr.bf16.mxu0 %v396_v32  ;;  %v124_v10 = vmul.f32 %v347_v4, %v462_v9  ;;  %356 = vrsqrt.f32 %v94_v19 }
  0xa9   :  { %358 = vrsqrt.f32 %v93_v22  ;;  %v78_v8 = vpop.xlane.xlu1 %77  ;;  %v76_v30 = vpop.xlane.xlu0 %75 }
  0xaa   :  { %v349_v14 = vpop.eup %348  ;;  %v312_v5 = vpack.c.bf16 %v125_v11, %v124_v10  ;;  %v96_v33 = vmax.f32 %v78_v8, 1e-24  ;;  %v95_v35 = vmax.f32 %v76_v30, 1e-24 }
  0xab   :  { %v351_v18 = vpop.eup %350  ;;  %v127_v26 = vmul.f32 %v349_v14, %v471_v12 }
  0xac   :  { %v126_v23 = vmul.f32 %v351_v18, %v476_v13  ;;  %360 = vrsqrt.f32 %v96_v33 }
  0xad   :  { %362 = vrsqrt.f32 %v95_v35  ;;  %v82_v12 = vpop.xlane.xlu1 %81  ;;  %v80_v39 = vpop.xlane.xlu0 %79 }
  0xae   :  { %v353_v9 = vpop.eup %352  ;;  %v315_v27 = vpack.c.bf16 %v127_v26, %v126_v23  ;;  %v98_v41 = vmax.f32 %v82_v12, 1e-24  ;;  %v97_v42 = vmax.f32 %v80_v39, 1e-24 }
  0xaf   :  { %310 = vmatpush3.bf16.xpose.msra.mxu0 %v309_v2  ;;  %v355_v31 = vpop.eup %354  ;;  %v129_v37 = vmul.f32 %v353_v9, %v485_v16 }
  0xb0   :  { %311 = vmatprep.subr.bf16.mxu0 %v396_v32  ;;  %v128_v36 = vmul.f32 %v355_v31, %v490_v17  ;;  %364 = vrsqrt.f32 %v98_v41 }
  0xb1   :  { %366 = vrsqrt.f32 %v97_v42  ;;  %v117_v52 = vpop.xlane.xlu0 %116  ;;  %v215_v53 = vpop.permute.xlu1 %214 }
  0xb2   :  { %v357_v13 = vpop.eup %356  ;;  %v318_v38 = vpack.c.bf16 %v129_v37, %v128_v36 }
  0xb3   :  { %v359_v40 = vpop.eup %358  ;;  %v131_v44 = vmul.f32 %v357_v13, %v499_v20 }
  0xb4   :  { %v130_v43 = vmul.f32 %v359_v40, %v504_v21 }
  0xb6   :  { %v361_v16 = vpop.eup %360  ;;  %v321_v17 = vpack.c.bf16 %v131_v44, %v130_v43 }
  0xb7   :  { %313 = vmatpush3.bf16.xpose.msra.mxu0 %v312_v5  ;;  %v363_v45 = vpop.eup %362  ;;  %v133_v47 = vmul.f32 %v361_v16, %v513_v24  ;;  %v251_v24 = vld [vmem:[%s593_s3] ss:$0 sm:$0xff]  ;;  %s400_s3 = smov [#allocation2]  }
  0xb8   :  { %314 = vmatprep.subr.bf16.mxu0 %v396_v32  ;;  %v132_v46 = vmul.f32 %v363_v45, %v518_v25  ;;  %v118_v25 = vmax.f32 %v117_v52, 1e-24  ;;  %vm216_vm1 = vcmp.eq.s32.totalorder %v251_v24, %v215_v53  ;;  %s243_s24 = sshll.u32 %s400_s3, 4  ;;  %s244_s24 = int_to_ptr.vmem [resolvable:$true] %s243_s24 }
  0xb9   :  { %s372_s25 = scalar_lea.vmem %s244_s24, 128  ;;  %p377_p1 = scmp.lt.s32.totalorder %s244_s24, %s244_s24 }
  0xba   :  { %v365_v48 = vpop.eup %364  ;;  %v324_v49 = vpack.c.bf16 %v133_v47, %v132_v46  ;;  %368 = vrsqrt.f32 %v118_v25  ;;  %p373_p0 = scmp.ne.s32.totalorder %s244_s24, %s372_s25  ;;  %p378_p2 = scmp.lt.s32.totalorder %s372_s25, %s372_s25 }
  0xbb   :  { %v367_v50 = vpop.eup %366  ;;  %v135_v21 = vmul.f32 %v365_v48, %v527_v28 }
  0xbc   :  { %v134_v20 = vmul.f32 %v367_v50, %v532_v29  ;;  %p379_p3 = por %p378_p2, %p377_p1 }
  0xbe   :  { %v327_v51 = vpack.c.bf16 %v135_v21, %v134_v20  ;;  %p380_p4 = pnand %p379_p3, %p373_p0 }
  0xbf   :  { %316 = vmatpush3.bf16.xpose.msra.mxu0 %v315_v27 }
  0xc0   :  { %317 = vmatprep.subr.bf16.mxu0 %v396_v32 }
  0xc4   :  { %v369_v54 = vpop.eup %368 }
  0xc7   :  { %319 = vmatpush3.bf16.xpose.msra.mxu0 %v318_v38 }
  0xc8   :  { %320 = vmatprep.subr.bf16.mxu0 %v396_v32 }
  0xcf   :  { %322 = vmatpush3.bf16.xpose.msra.mxu0 %v321_v17 }
  0xd0   :  { %323 = vmatprep.subr.bf16.mxu0 %v396_v32 }
  0xd7   :  { %325 = vmatpush3.bf16.xpose.msra.mxu0 %v324_v49 }
  0xd8   :  { %326 = vmatprep.subr.bf16.mxu0 %v396_v32 }
  0xdf   :  { %328 = vmatpush3.bf16.xpose.msra.mxu0 %v327_v51 }
  0xe6   :  { %303 = vmatmul.mubr.f32.vlgmr.msra.gmra.mrb[0].mxu0 %v542_v34 }
 0x1b9   :  { %v202_v55 = vpop.f32.mrb[0].mxu0 }
 0x1ba   :  { %v206_v29 = vmul.f32 %v369_v54, %v202_v55  ;;  %v304_v56 = vpop.f32.mrb[1].mxu0 }
 0x1bc   :  { %v217_v28 = vsel %vm216_vm1, %v206_v29, 0.0  ;;  %v234_v4 = vmul.f32 30.0, %v206_v29 }
 0x1bd   :  { %218 = vadd.xlane.f32.xlu0 %v217_v28 }
 0x24a   :  { %v219_v32 = vpop.xlane.xlu0 %218 }
 0x24b   :  { %v252_v57 = vclamps-f32 %v219_v32, 0.9999999 }
 0x24d   :  { %v223_v58 = vmul.f32 %v252_v57, %v252_v57  ;;  %v222_v3 = vmul.f32 26.327477, %v252_v57 }
 0x24f   :  { %v224_v34 = vsub.f32 1.0, %v223_v58 }
 0x251   :  { %370 = vrsqrt.f32 %v224_v34  ;;  %vm227_vm2 = vcmp.eq.f32.partialorder %v224_v34, inf  ;;  %v230_v61 = vand.u32 2147483648, %v224_v34  ;;  %vm229_vm3 = vcmp.eq.f32.partialorder %v224_v34, 0.0 }
 0x25b   :  { %v371_v59 = vpop.eup %370 }
 0x25c   :  { %v226_v60 = vmul.f32 %v371_v59, %v224_v34 }
 0x25e   :  { %v228_v62 = vsel %vm227_vm2, %v224_v34, %v226_v60 }
 0x25f   :  { %v231_v63 = vsel %vm229_vm3, %v230_v61, %v228_v62 }
 0x260   :  { %v232_v0 = vmul.f32 14.382766, %v231_v63 }
 0x262   :  { %v233_v2 = vsub.f32 %v222_v3, %v232_v0 }
 0x264   :  { %v235_v6 = vsel %vm216_vm1, %v233_v2, %v234_v4 }
 0x265   :  { %236 = vst [vmem:[#allocation2] sm:$0xff] %v235_v6 }
 0x266   :  { %383 = shalt.err (!%p380_p4)
}
 0x267   :  { %s384_s28 = scalar_lea.hbm %s594_s4, 128 }
 0x268   :  { %p385_p5 = scmp.ne.s32.totalorder %s594_s4, %s384_s28  ;;  %p388_p6 = scmp.lt.u32.totalorder %s384_s28, %s594_s4 }
 0x26a   :  { %p390_p7 = pnand %p388_p6, %p385_p5 }
 0x26c   :  { %393 = shalt.err (!%p390_p7)
}
 0x26d   :  { %246 = dma.vmem_to_hbm [thread:$0]  %s244_s24, 128, %s594_s4, [#allocation3]  }
 0x26e   :  { %394 = dma.done.wait [#allocation3], 128  }
 0x26f   :  { %395 = vsyncadd [#allocation3], 4294967168 }
 0x270   :  { %250 = vsyncpa [#allocation3], 1 }

</bundles_post_ra>
